<compile_context>
chip_gen: v7x
topology: tpu7x:2x2x1
jax: 0.10.0
libtpu: 0.0.40
codegen_flags: <defaults>
</compile_context>

<pallas_src>
import numpy as np
import jax
import jax.numpy as jnp
from jax import lax
from jax.experimental import pallas as pl
from jax.experimental.pallas import tpu as pltpu

_LOG2 = float(np.log(2.0))


def _make_controller_kernel(n_steps, n_layers):
    """Kernel over G timesteps x B states, all inputs resident in VMEM/SMEM."""

    def kernel(tidx_ref, x_ref, xbar_ref, k_ref, kT_ref, b_ref, a_ref, o_ref):
        A = a_ref[...]                 # (n, n)  resident interconnection matrix
        xbar = xbar_ref[...]           # (n, 1)

        for g in range(n_steps):       # statically unrolled over timesteps
            tg = tidx_ref[g]           # SMEM scalar -> dynamic leading-dim index
            z = x_ref[g] - xbar        # (n, B): batch on lanes (column vectors)

            # ---------- forward through the masked log-cosh layers ----------
            tanhs = []                 # one (8,128) vreg per layer, stays in regs
            for i in range(n_layers):
                w = k_ref[tg * n_layers + i]                    # (n, n) = K_i(t)*mask
                pre = lax.dot_general(w, z, (((1,), (0,)), ((), ())),
                                      preferred_element_type=jnp.float32)
                pre = pre + b_ref[tg * n_layers + i]            # (n,1) lane broadcast
                a_abs = jnp.abs(pre)
                e = jnp.exp(-2.0 * a_abs)                       # shared EUP exp
                sgn = jnp.where(pre >= 0.0, 1.0, -1.0)
                # tanh(pre) = sign(pre)*(1-e)/(1+e); 1+e in (1,2] so the
                # approximate reciprocal is well conditioned.
                tanhs.append(sgn * (1.0 - e) * pl.reciprocal(1.0 + e, approx=True))
                # logcosh(pre) = |pre| + log(1+e) - log 2   (overflow-safe)
                z = a_abs + jnp.log(1.0 + e) - _LOG2

            # ---------- manual backprop of H = sum(z_L) down to dH/dz_0 ----------
            grad = jnp.ones_like(z)                             # dH/dz_L
            for i in reversed(range(n_layers)):
                wT = kT_ref[tg * n_layers + i]                  # pre-transposed copy
                grad = lax.dot_general(wT, grad * tanhs[i],
                                       (((1,), (0,)), ((), ())),
                                       preferred_element_type=jnp.float32)

            # ---------- f = A @ dHdx  (column layout; A precomputed on host) ----------
            o_ref[g] = lax.dot_general(A, grad, (((1,), (0,)), ((), ())),
                                       preferred_element_type=jnp.float32)

    return kernel


def prepare_controller_constants(K, b, mask, GG, maskGG, J, R, r):
    """One-time host prep (t/x-invariant): time-major flattened pre-masked weights,
    a pre-transposed copy, column biases, and A."""
    L, n, _, T = K.shape
    Km = K * mask[None, :, :, None]                                    # (L, n, n, T)
    Km_t = jnp.transpose(Km, (3, 0, 1, 2)).reshape(T * L, n, n)        # [t*L+i] = W_i(t)
    KmT_t = jnp.transpose(Km, (3, 0, 2, 1)).reshape(T * L, n, n)       # [t*L+i] = W_i(t).T
    b_t = jnp.transpose(b, (3, 0, 2, 1)).reshape(T * L, n, 1)          # column biases
    A = J + (GG * maskGG - GG.T * maskGG.T) - r * R                    # (n, n)
    return Km_t, KmT_t, b_t, A


def time_indices(ts, h, T):
    """PyTorch uses int(t/h) (truncation).  Add a tiny eps so exact multiples of h
    do not fall off by one due to fp error (e.g. 0.3/0.1 == 2.999...)."""
    idx = np.floor(np.asarray(ts, np.float64) / float(h) + 1e-6).astype(np.int32)
    return jnp.asarray(np.clip(idx, 0, T - 1))


def controller_forward_batched(t_idx, x_cols, xbar_col, Km_t, KmT_t, b_t, A, *, n_layers):
    """Batched Controller.forward over G timesteps x B states in ONE kernel launch.

      t_idx    : (G,)        int32  -- time index per step (lives in SMEM)
      x_cols   : (G, n, B)   f32    -- lane-dense: B states as column vectors
      xbar_col : (n, 1)      f32
      Km_t     : (T*L, n, n) f32    -- time-major, pre-masked weights (K*mask)
      KmT_t    : (T*L, n, n) f32    -- pre-transposed copy for the backward dots
      b_t      : (T*L, n, 1) f32    -- time-major column biases
      A        : (n, n)      f32    -- J + (GG*mGG - GG.T*mGG.T) - r*R

    Returns (G, n, B); column [g, :, j] == A @ dH/dx evaluated at x_cols[g, :, j]
    (i.e. the transpose of the original (1, n) row output, kept lane-dense).
    """
    G, n, B = x_cols.shape

    # VMEM budget (feedback: re-derive from actual buffers, keep <= 48 MiB for v7x)
    bufs = (x_cols, xbar_col, Km_t, KmT_t, b_t, A)
    vmem_bytes = sum(int(a.size) * a.dtype.itemsize for a in bufs) + G * n * B * 4
    vmem_limit = int(min(max(2 * vmem_bytes + (1 << 20), 4 << 20), 48 << 20))

    vspec = pl.BlockSpec(memory_space=pltpu.MemorySpace.VMEM)
    return pl.pallas_call(
        _make_controller_kernel(G, n_layers),
        out_shape=jax.ShapeDtypeStruct((G, n, B), jnp.float32),
        in_specs=[
            pl.BlockSpec(memory_space=pltpu.MemorySpace.SMEM),   # t_idx (scalars)
            vspec,                                               # x_cols
            vspec,                                               # xbar_col
            vspec,                                               # Km_t   (resident)
            vspec,                                               # KmT_t  (resident)
            vspec,                                               # b_t    (resident)
            vspec,                                               # A
        ],
        out_specs=pl.BlockSpec(memory_space=pltpu.MemorySpace.VMEM),
        compiler_params=pltpu.CompilerParams(vmem_limit_bytes=vmem_limit),
    )(t_idx, x_cols, xbar_col, Km_t, KmT_t, b_t, A)


def build_static_matrices(n_agents, interconnection):
    """Replicates Controller.__init__ construction of J, R, mask, maskGG."""
    ni, ni2 = 4, 2
    n = ni * n_agents
    J4 = np.zeros((ni, ni)); J4[:ni2, ni2:] = -np.eye(ni2); J4[ni2:, :ni2] = np.eye(ni2)
    R4 = np.zeros((ni, ni)); R4[:ni2, :ni2] = np.eye(ni2)
    mask4 = np.ones((ni, ni))
    J = np.zeros((n, n)); R = np.zeros((n, n)); mask = np.zeros((n, n))
    for a in range(n_agents):
        s = ni * a
        J[s:s + ni, s:s + ni] = J4
        R[s:s + ni, s:s + ni] = R4
        mask[s:s + ni, s:s + ni] = mask4
    maskGG = np.zeros((n, n))
    for i in range(n_agents):
        for j in range(n_agents):
            if interconnection[i, j] != 0 and i != j:
                maskGG[ni * i:ni * (i + 1), ni * j:ni * (j + 1)] = 1.0
    f32 = lambda a: jnp.asarray(a, jnp.float32)
    return f32(J), f32(R), f32(mask), f32(maskGG)


def reference_batched(t_idx, x_rows, xbar_col, K, b, mask, GG, maskGG, J, R, r):
    """Pure-JAX reference: jax.grad through the original row-vector formulation,
    vmapped over the state batch (replaces torch.autograd.grad)."""
    A = J + (GG * maskGG - GG.T * maskGG.T) - r * R
    xbar_row = xbar_col.T                                   # (1, n)
    outs = []
    for g in range(x_rows.shape[0]):
        ti = int(t_idx[g])

        def H_single(xrow):
            z = xrow[None, :] - xbar_row                    # (1, n)
            for i in range(K.shape[0]):
                w = K[i, :, :, ti] * mask
                z = z @ w.T + b[i, :, :, ti]
                z = jnp.log(jnp.cosh(z))
            return z.sum()

        dHdx = jax.vmap(jax.grad(H_single))(x_rows[g])      # (B, n)
        outs.append(dHdx @ A.T)
    return jnp.stack(outs)                                  # (G, B, n)


if __name__ == "__main__":
    # small, deterministic configuration (batch sized for full 128-lane density)
    n_agents = 2
    n_layers = 2
    T = 8                  # number of time samples in K / b
    ni = 4
    n = ni * n_agents      # = 8  (sublane axis of activations)
    B = 128                # states per timestep (lane axis -> full vreg width)
    G = 4                  # distinct evaluation times
    h = 0.1
    r_val = 0.5
    ts = [0.0, 0.3, 0.35, 0.7]      # -> t_idx = [0, 3, 3, 7]

    interconnection = np.ones((n_agents, n_agents), dtype=np.float32)
    J, R, mask, maskGG = build_static_matrices(n_agents, interconnection)

    key = jax.random.PRNGKey(0)
    k1, k2, k3, k4, k5 = jax.random.split(key, 5)
    # synthetic outputs of the (absent) nncontroller: K, b, GG
    K = 0.3 * jax.random.normal(k1, (n_layers, n, n, T), jnp.float32)
    b = 0.1 * jax.random.normal(k2, (n_layers, 1, n, T), jnp.float32)
    GG = 0.3 * jax.random.normal(k3, (n, n), jnp.float32)
    x_rows = jax.random.normal(k4, (G, B, n), jnp.float32)   # G*B states (row form)
    xbar_col = 0.2 * jax.random.normal(k5, (n, 1), jnp.float32)

    # one-time (per-trajectory) host prep -- hoisted out of the per-call path
    Km_t, KmT_t, b_t, A = prepare_controller_constants(K, b, mask, GG, maskGG, J, R, r_val)
    t_idx = time_indices(ts, h, T)

    # lane-dense input slab: batch on lanes
    x_cols = jnp.transpose(x_rows, (0, 2, 1))                # (G, n, B)
    out_cols = controller_forward_batched(t_idx, x_cols, xbar_col, Km_t, KmT_t, b_t, A,
                                          n_layers=n_layers)
    out_cols = jax.block_until_ready(out_cols)

    # reference: batched jax.grad through the original formulation
    ref = reference_batched(np.asarray(t_idx), x_rows, xbar_col, K, b,
                            mask, GG, maskGG, J, R, r_val)

    np.testing.assert_allclose(np.transpose(np.asarray(out_cols), (0, 2, 1)),
                               np.asarray(ref), rtol=2e-3, atol=2e-3)
    print("KERNEL_OK")
</pallas_src>

<mosaic_0001>
module attributes {stable_mosaic.version = 11 : i64} {
  func.func @kernel(%arg0: memref<4xi32, #tpu.memory_space<smem>>, %arg1: memref<4x8x128xf32, #tpu.memory_space<vmem>>, %arg2: memref<8x1xf32, #tpu.memory_space<vmem>>, %arg3: memref<16x8x8xf32, #tpu.memory_space<vmem>>, %arg4: memref<16x8x8xf32, #tpu.memory_space<vmem>>, %arg5: memref<16x8x1xf32, #tpu.memory_space<vmem>>, %arg6: memref<8x8xf32, #tpu.memory_space<vmem>>, %arg7: memref<4x8x128xf32, #tpu.memory_space<vmem>>) attributes {dimension_semantics = [], scalar_prefetch = 0 : i64, scratch_operands = 0 : i64, tpu.core_type = #tpu.core_type<tc>} {
    %c0 = arith.constant 0 : index
    %c0_0 = arith.constant 0 : index
    %0 = vector.load %arg6[%c0, %c0_0] : memref<8x8xf32, #tpu.memory_space<vmem>>, vector<8x8xf32>
    %c0_1 = arith.constant 0 : index
    %c0_2 = arith.constant 0 : index
    %1 = vector.load %arg2[%c0_1, %c0_2] : memref<8x1xf32, #tpu.memory_space<vmem>>, vector<8x1xf32>
    %c0_3 = arith.constant 0 : index
    %2 = memref.load %arg0[%c0_3] : memref<4xi32, #tpu.memory_space<smem>>
    %c0_4 = arith.constant 0 : index
    %c0_5 = arith.constant 0 : index
    %c0_6 = arith.constant 0 : index
    %3 = vector.load %arg1[%c0_4, %c0_5, %c0_6] : memref<4x8x128xf32, #tpu.memory_space<vmem>>, vector<1x8x128xf32>
    %4 = vector.shape_cast %3 : vector<1x8x128xf32> to vector<8x128xf32>
    %5 = vector.broadcast %1 : vector<8x1xf32> to vector<8x128xf32>
    %6 = arith.subf %4, %5 : vector<8x128xf32>
    %c2_i32 = arith.constant 2 : i32
    %7 = arith.muli %2, %c2_i32 : i32
    %c0_i32 = arith.constant 0 : i32
    %8 = arith.addi %7, %c0_i32 : i32
    %9 = arith.index_cast %8 : i32 to index
    %c0_7 = arith.constant 0 : index
    %c0_8 = arith.constant 0 : index
    %10 = vector.load %arg3[%9, %c0_7, %c0_8] : memref<16x8x8xf32, #tpu.memory_space<vmem>>, vector<1x8x8xf32>
    %11 = vector.shape_cast %10 : vector<1x8x8xf32> to vector<8x8xf32>
    %cst = arith.constant dense<0.000000e+00> : vector<8x128xf32>
    %12 = tpu.matmul %11, %6, %cst {dimension_numbers = #tpu.dot_dimension_numbers<[1], [0], [0], [1], [0, 0, 1, 1], [], []>} : vector<8x8xf32>, vector<8x128xf32>, vector<8x128xf32> -> vector<8x128xf32>
    %c2_i32_9 = arith.constant 2 : i32
    %13 = arith.muli %2, %c2_i32_9 : i32
    %c0_i32_10 = arith.constant 0 : i32
    %14 = arith.addi %13, %c0_i32_10 : i32
    %15 = arith.index_cast %14 : i32 to index
    %c0_11 = arith.constant 0 : index
    %c0_12 = arith.constant 0 : index
    %16 = vector.load %arg5[%15, %c0_11, %c0_12] : memref<16x8x1xf32, #tpu.memory_space<vmem>>, vector<1x8x1xf32>
    %17 = vector.shape_cast %16 : vector<1x8x1xf32> to vector<8x1xf32>
    %18 = vector.broadcast %17 : vector<8x1xf32> to vector<8x128xf32>
    %19 = arith.addf %12, %18 : vector<8x128xf32>
    %20 = math.absf %19 : vector<8x128xf32>
    %cst_13 = arith.constant -2.000000e+00 : f32
    %21 = vector.broadcast %cst_13 : f32 to vector<8x128xf32>
    %22 = arith.mulf %21, %20 : vector<8x128xf32>
    %23 = math.exp %22 : vector<8x128xf32>
    %cst_14 = arith.constant 0.000000e+00 : f32
    %24 = vector.broadcast %cst_14 : f32 to vector<8x128xf32>
    %25 = arith.cmpf oge, %19, %24 : vector<8x128xf32>
    %cst_15 = arith.constant 1.000000e+00 : f32
    %cst_16 = arith.constant -1.000000e+00 : f32
    %26 = vector.broadcast %cst_15 : f32 to vector<8x128xf32>
    %27 = vector.broadcast %cst_16 : f32 to vector<8x128xf32>
    %28 = arith.select %25, %26, %27 : vector<8x128xi1>, vector<8x128xf32>
    %cst_17 = arith.constant 1.000000e+00 : f32
    %29 = vector.broadcast %cst_17 : f32 to vector<8x128xf32>
    %30 = arith.subf %29, %23 : vector<8x128xf32>
    %31 = arith.mulf %28, %30 : vector<8x128xf32>
    %cst_18 = arith.constant 1.000000e+00 : f32
    %32 = vector.broadcast %cst_18 : f32 to vector<8x128xf32>
    %33 = arith.addf %32, %23 : vector<8x128xf32>
    %34 = tpu.reciprocal %33 {approx = true} : vector<8x128xf32> -> vector<8x128xf32>
    %35 = arith.mulf %31, %34 : vector<8x128xf32>
    %cst_19 = arith.constant 1.000000e+00 : f32
    %36 = vector.broadcast %cst_19 : f32 to vector<8x128xf32>
    %37 = arith.addf %36, %23 : vector<8x128xf32>
    %38 = math.log %37 : vector<8x128xf32>
    %39 = arith.addf %20, %38 : vector<8x128xf32>
    %cst_20 = arith.constant 0.693147182 : f32
    %40 = vector.broadcast %cst_20 : f32 to vector<8x128xf32>
    %41 = arith.subf %39, %40 : vector<8x128xf32>
    %c2_i32_21 = arith.constant 2 : i32
    %42 = arith.muli %2, %c2_i32_21 : i32
    %c1_i32 = arith.constant 1 : i32
    %43 = arith.addi %42, %c1_i32 : i32
    %44 = arith.index_cast %43 : i32 to index
    %c0_22 = arith.constant 0 : index
    %c0_23 = arith.constant 0 : index
    %45 = vector.load %arg3[%44, %c0_22, %c0_23] : memref<16x8x8xf32, #tpu.memory_space<vmem>>, vector<1x8x8xf32>
    %46 = vector.shape_cast %45 : vector<1x8x8xf32> to vector<8x8xf32>
    %cst_24 = arith.constant dense<0.000000e+00> : vector<8x128xf32>
    %47 = tpu.matmul %46, %41, %cst_24 {dimension_numbers = #tpu.dot_dimension_numbers<[1], [0], [0], [1], [0, 0, 1, 1], [], []>} : vector<8x8xf32>, vector<8x128xf32>, vector<8x128xf32> -> vector<8x128xf32>
    %c2_i32_25 = arith.constant 2 : i32
    %48 = arith.muli %2, %c2_i32_25 : i32
    %c1_i32_26 = arith.constant 1 : i32
    %49 = arith.addi %48, %c1_i32_26 : i32
    %50 = arith.index_cast %49 : i32 to index
    %c0_27 = arith.constant 0 : index
    %c0_28 = arith.constant 0 : index
    %51 = vector.load %arg5[%50, %c0_27, %c0_28] : memref<16x8x1xf32, #tpu.memory_space<vmem>>, vector<1x8x1xf32>
    %52 = vector.shape_cast %51 : vector<1x8x1xf32> to vector<8x1xf32>
    %53 = vector.broadcast %52 : vector<8x1xf32> to vector<8x128xf32>
    %54 = arith.addf %47, %53 : vector<8x128xf32>
    %55 = math.absf %54 : vector<8x128xf32>
    %cst_29 = arith.constant -2.000000e+00 : f32
    %56 = vector.broadcast %cst_29 : f32 to vector<8x128xf32>
    %57 = arith.mulf %56, %55 : vector<8x128xf32>
    %58 = math.exp %57 : vector<8x128xf32>
    %cst_30 = arith.constant 0.000000e+00 : f32
    %59 = vector.broadcast %cst_30 : f32 to vector<8x128xf32>
    %60 = arith.cmpf oge, %54, %59 : vector<8x128xf32>
    %cst_31 = arith.constant 1.000000e+00 : f32
    %cst_32 = arith.constant -1.000000e+00 : f32
    %61 = vector.broadcast %cst_31 : f32 to vector<8x128xf32>
    %62 = vector.broadcast %cst_32 : f32 to vector<8x128xf32>
    %63 = arith.select %60, %61, %62 : vector<8x128xi1>, vector<8x128xf32>
    %cst_33 = arith.constant 1.000000e+00 : f32
    %64 = vector.broadcast %cst_33 : f32 to vector<8x128xf32>
    %65 = arith.subf %64, %58 : vector<8x128xf32>
    %66 = arith.mulf %63, %65 : vector<8x128xf32>
    %cst_34 = arith.constant 1.000000e+00 : f32
    %67 = vector.broadcast %cst_34 : f32 to vector<8x128xf32>
    %68 = arith.addf %67, %58 : vector<8x128xf32>
    %69 = tpu.reciprocal %68 {approx = true} : vector<8x128xf32> -> vector<8x128xf32>
    %70 = arith.mulf %66, %69 : vector<8x128xf32>
    %cst_35 = arith.constant 1.000000e+00 : f32
    %71 = vector.broadcast %cst_35 : f32 to vector<8x128xf32>
    %c2_i32_36 = arith.constant 2 : i32
    %72 = arith.muli %2, %c2_i32_36 : i32
    %c1_i32_37 = arith.constant 1 : i32
    %73 = arith.addi %72, %c1_i32_37 : i32
    %74 = arith.index_cast %73 : i32 to index
    %c0_38 = arith.constant 0 : index
    %c0_39 = arith.constant 0 : index
    %75 = vector.load %arg4[%74, %c0_38, %c0_39] : memref<16x8x8xf32, #tpu.memory_space<vmem>>, vector<1x8x8xf32>
    %76 = vector.shape_cast %75 : vector<1x8x8xf32> to vector<8x8xf32>
    %77 = arith.mulf %71, %70 : vector<8x128xf32>
    %cst_40 = arith.constant dense<0.000000e+00> : vector<8x128xf32>
    %78 = tpu.matmul %76, %77, %cst_40 {dimension_numbers = #tpu.dot_dimension_numbers<[1], [0], [0], [1], [0, 0, 1, 1], [], []>} : vector<8x8xf32>, vector<8x128xf32>, vector<8x128xf32> -> vector<8x128xf32>
    %c2_i32_41 = arith.constant 2 : i32
    %79 = arith.muli %2, %c2_i32_41 : i32
    %c0_i32_42 = arith.constant 0 : i32
    %80 = arith.addi %79, %c0_i32_42 : i32
    %81 = arith.index_cast %80 : i32 to index
    %c0_43 = arith.constant 0 : index
    %c0_44 = arith.constant 0 : index
    %82 = vector.load %arg4[%81, %c0_43, %c0_44] : memref<16x8x8xf32, #tpu.memory_space<vmem>>, vector<1x8x8xf32>
    %83 = vector.shape_cast %82 : vector<1x8x8xf32> to vector<8x8xf32>
    %84 = arith.mulf %78, %35 : vector<8x128xf32>
    %cst_45 = arith.constant dense<0.000000e+00> : vector<8x128xf32>
    %85 = tpu.matmul %83, %84, %cst_45 {dimension_numbers = #tpu.dot_dimension_numbers<[1], [0], [0], [1], [0, 0, 1, 1], [], []>} : vector<8x8xf32>, vector<8x128xf32>, vector<8x128xf32> -> vector<8x128xf32>
    %cst_46 = arith.constant dense<0.000000e+00> : vector<8x128xf32>
    %86 = tpu.matmul %0, %85, %cst_46 {dimension_numbers = #tpu.dot_dimension_numbers<[1], [0], [0], [1], [0, 0, 1, 1], [], []>} : vector<8x8xf32>, vector<8x128xf32>, vector<8x128xf32> -> vector<8x128xf32>
    %c0_47 = arith.constant 0 : index
    %c0_48 = arith.constant 0 : index
    %c0_49 = arith.constant 0 : index
    %87 = vector.load %arg7[%c0_47, %c0_48, %c0_49] : memref<4x8x128xf32, #tpu.memory_space<vmem>>, vector<1x8x128xf32>
    %88 = vector.shape_cast %87 : vector<1x8x128xf32> to vector<8x128xf32>
    %89 = vector.shape_cast %86 : vector<8x128xf32> to vector<1x8x128xf32>
    tpu.vector_store %arg7[%c0_47, %c0_48, %c0_49], %89 {strides = array<i32>} : memref<4x8x128xf32, #tpu.memory_space<vmem>>, vector<1x8x128xf32>,
    %c1 = arith.constant 1 : index
    %90 = memref.load %arg0[%c1] : memref<4xi32, #tpu.memory_space<smem>>
    %c1_50 = arith.constant 1 : index
    %c0_51 = arith.constant 0 : index
    %c0_52 = arith.constant 0 : index
    %91 = vector.load %arg1[%c1_50, %c0_51, %c0_52] : memref<4x8x128xf32, #tpu.memory_space<vmem>>, vector<1x8x128xf32>
    %92 = vector.shape_cast %91 : vector<1x8x128xf32> to vector<8x128xf32>
    %93 = vector.broadcast %1 : vector<8x1xf32> to vector<8x128xf32>
    %94 = arith.subf %92, %93 : vector<8x128xf32>
    %c2_i32_53 = arith.constant 2 : i32
    %95 = arith.muli %90, %c2_i32_53 : i32
    %c0_i32_54 = arith.constant 0 : i32
    %96 = arith.addi %95, %c0_i32_54 : i32
    %97 = arith.index_cast %96 : i32 to index
    %c0_55 = arith.constant 0 : index
    %c0_56 = arith.constant 0 : index
    %98 = vector.load %arg3[%97, %c0_55, %c0_56] : memref<16x8x8xf32, #tpu.memory_space<vmem>>, vector<1x8x8xf32>
    %99 = vector.shape_cast %98 : vector<1x8x8xf32> to vector<8x8xf32>
    %cst_57 = arith.constant dense<0.000000e+00> : vector<8x128xf32>
    %100 = tpu.matmul %99, %94, %cst_57 {dimension_numbers = #tpu.dot_dimension_numbers<[1], [0], [0], [1], [0, 0, 1, 1], [], []>} : vector<8x8xf32>, vector<8x128xf32>, vector<8x128xf32> -> vector<8x128xf32>
    %c2_i32_58 = arith.constant 2 : i32
    %101 = arith.muli %90, %c2_i32_58 : i32
    %c0_i32_59 = arith.constant 0 : i32
    %102 = arith.addi %101, %c0_i32_59 : i32
    %103 = arith.index_cast %102 : i32 to index
    %c0_60 = arith.constant 0 : index
    %c0_61 = arith.constant 0 : index
    %104 = vector.load %arg5[%103, %c0_60, %c0_61] : memref<16x8x1xf32, #tpu.memory_space<vmem>>, vector<1x8x1xf32>
    %105 = vector.shape_cast %104 : vector<1x8x1xf32> to vector<8x1xf32>
    %106 = vector.broadcast %105 : vector<8x1xf32> to vector<8x128xf32>
    %107 = arith.addf %100, %106 : vector<8x128xf32>
    %108 = math.absf %107 : vector<8x128xf32>
    %cst_62 = arith.constant -2.000000e+00 : f32
    %109 = vector.broadcast %cst_62 : f32 to vector<8x128xf32>
    %110 = arith.mulf %109, %108 : vector<8x128xf32>
    %111 = math.exp %110 : vector<8x128xf32>
    %cst_63 = arith.constant 0.000000e+00 : f32
    %112 = vector.broadcast %cst_63 : f32 to vector<8x128xf32>
    %113 = arith.cmpf oge, %107, %112 : vector<8x128xf32>
    %cst_64 = arith.constant 1.000000e+00 : f32
    %cst_65 = arith.constant -1.000000e+00 : f32
    %114 = vector.broadcast %cst_64 : f32 to vector<8x128xf32>
    %115 = vector.broadcast %cst_65 : f32 to vector<8x128xf32>
    %116 = arith.select %113, %114, %115 : vector<8x128xi1>, vector<8x128xf32>
    %cst_66 = arith.constant 1.000000e+00 : f32
    %117 = vector.broadcast %cst_66 : f32 to vector<8x128xf32>
    %118 = arith.subf %117, %111 : vector<8x128xf32>
    %119 = arith.mulf %116, %118 : vector<8x128xf32>
    %cst_67 = arith.constant 1.000000e+00 : f32
    %120 = vector.broadcast %cst_67 : f32 to vector<8x128xf32>
    %121 = arith.addf %120, %111 : vector<8x128xf32>
    %122 = tpu.reciprocal %121 {approx = true} : vector<8x128xf32> -> vector<8x128xf32>
    %123 = arith.mulf %119, %122 : vector<8x128xf32>
    %cst_68 = arith.constant 1.000000e+00 : f32
    %124 = vector.broadcast %cst_68 : f32 to vector<8x128xf32>
    %125 = arith.addf %124, %111 : vector<8x128xf32>
    %126 = math.log %125 : vector<8x128xf32>
    %127 = arith.addf %108, %126 : vector<8x128xf32>
    %cst_69 = arith.constant 0.693147182 : f32
    %128 = vector.broadcast %cst_69 : f32 to vector<8x128xf32>
    %129 = arith.subf %127, %128 : vector<8x128xf32>
    %c2_i32_70 = arith.constant 2 : i32
    %130 = arith.muli %90, %c2_i32_70 : i32
    %c1_i32_71 = arith.constant 1 : i32
    %131 = arith.addi %130, %c1_i32_71 : i32
    %132 = arith.index_cast %131 : i32 to index
    %c0_72 = arith.constant 0 : index
    %c0_73 = arith.constant 0 : index
    %133 = vector.load %arg3[%132, %c0_72, %c0_73] : memref<16x8x8xf32, #tpu.memory_space<vmem>>, vector<1x8x8xf32>
    %134 = vector.shape_cast %133 : vector<1x8x8xf32> to vector<8x8xf32>
    %cst_74 = arith.constant dense<0.000000e+00> : vector<8x128xf32>
    %135 = tpu.matmul %134, %129, %cst_74 {dimension_numbers = #tpu.dot_dimension_numbers<[1], [0], [0], [1], [0, 0, 1, 1], [], []>} : vector<8x8xf32>, vector<8x128xf32>, vector<8x128xf32> -> vector<8x128xf32>
    %c2_i32_75 = arith.constant 2 : i32
    %136 = arith.muli %90, %c2_i32_75 : i32
    %c1_i32_76 = arith.constant 1 : i32
    %137 = arith.addi %136, %c1_i32_76 : i32
    %138 = arith.index_cast %137 : i32 to index
    %c0_77 = arith.constant 0 : index
    %c0_78 = arith.constant 0 : index
    %139 = vector.load %arg5[%138, %c0_77, %c0_78] : memref<16x8x1xf32, #tpu.memory_space<vmem>>, vector<1x8x1xf32>
    %140 = vector.shape_cast %139 : vector<1x8x1xf32> to vector<8x1xf32>
    %141 = vector.broadcast %140 : vector<8x1xf32> to vector<8x128xf32>
    %142 = arith.addf %135, %141 : vector<8x128xf32>
    %143 = math.absf %142 : vector<8x128xf32>
    %cst_79 = arith.constant -2.000000e+00 : f32
    %144 = vector.broadcast %cst_79 : f32 to vector<8x128xf32>
    %145 = arith.mulf %144, %143 : vector<8x128xf32>
    %146 = math.exp %145 : vector<8x128xf32>
    %cst_80 = arith.constant 0.000000e+00 : f32
    %147 = vector.broadcast %cst_80 : f32 to vector<8x128xf32>
    %148 = arith.cmpf oge, %142, %147 : vector<8x128xf32>
    %cst_81 = arith.constant 1.000000e+00 : f32
    %cst_82 = arith.constant -1.000000e+00 : f32
    %149 = vector.broadcast %cst_81 : f32 to vector<8x128xf32>
    %150 = vector.broadcast %cst_82 : f32 to vector<8x128xf32>
    %151 = arith.select %148, %149, %150 : vector<8x128xi1>, vector<8x128xf32>
    %cst_83 = arith.constant 1.000000e+00 : f32
    %152 = vector.broadcast %cst_83 : f32 to vector<8x128xf32>
    %153 = arith.subf %152, %146 : vector<8x128xf32>
    %154 = arith.mulf %151, %153 : vector<8x128xf32>
    %cst_84 = arith.constant 1.000000e+00 : f32
    %155 = vector.broadcast %cst_84 : f32 to vector<8x128xf32>
    %156 = arith.addf %155, %146 : vector<8x128xf32>
    %157 = tpu.reciprocal %156 {approx = true} : vector<8x128xf32> -> vector<8x128xf32>
    %158 = arith.mulf %154, %157 : vector<8x128xf32>
    %cst_85 = arith.constant 1.000000e+00 : f32
    %159 = vector.broadcast %cst_85 : f32 to vector<8x128xf32>
    %c2_i32_86 = arith.constant 2 : i32
    %160 = arith.muli %90, %c2_i32_86 : i32
    %c1_i32_87 = arith.constant 1 : i32
    %161 = arith.addi %160, %c1_i32_87 : i32
    %162 = arith.index_cast %161 : i32 to index
    %c0_88 = arith.constant 0 : index
    %c0_89 = arith.constant 0 : index
    %163 = vector.load %arg4[%162, %c0_88, %c0_89] : memref<16x8x8xf32, #tpu.memory_space<vmem>>, vector<1x8x8xf32>
    %164 = vector.shape_cast %163 : vector<1x8x8xf32> to vector<8x8xf32>
    %165 = arith.mulf %159, %158 : vector<8x128xf32>
    %cst_90 = arith.constant dense<0.000000e+00> : vector<8x128xf32>
    %166 = tpu.matmul %164, %165, %cst_90 {dimension_numbers = #tpu.dot_dimension_numbers<[1], [0], [0], [1], [0, 0, 1, 1], [], []>} : vector<8x8xf32>, vector<8x128xf32>, vector<8x128xf32> -> vector<8x128xf32>
    %c2_i32_91 = arith.constant 2 : i32
    %167 = arith.muli %90, %c2_i32_91 : i32
    %c0_i32_92 = arith.constant 0 : i32
    %168 = arith.addi %167, %c0_i32_92 : i32
    %169 = arith.index_cast %168 : i32 to index
    %c0_93 = arith.constant 0 : index
    %c0_94 = arith.constant 0 : index
    %170 = vector.load %arg4[%169, %c0_93, %c0_94] : memref<16x8x8xf32, #tpu.memory_space<vmem>>, vector<1x8x8xf32>
    %171 = vector.shape_cast %170 : vector<1x8x8xf32> to vector<8x8xf32>
    %172 = arith.mulf %166, %123 : vector<8x128xf32>
    %cst_95 = arith.constant dense<0.000000e+00> : vector<8x128xf32>
    %173 = tpu.matmul %171, %172, %cst_95 {dimension_numbers = #tpu.dot_dimension_numbers<[1], [0], [0], [1], [0, 0, 1, 1], [], []>} : vector<8x8xf32>, vector<8x128xf32>, vector<8x128xf32> -> vector<8x128xf32>
    %cst_96 = arith.constant dense<0.000000e+00> : vector<8x128xf32>
    %174 = tpu.matmul %0, %173, %cst_96 {dimension_numbers = #tpu.dot_dimension_numbers<[1], [0], [0], [1], [0, 0, 1, 1], [], []>} : vector<8x8xf32>, vector<8x128xf32>, vector<8x128xf32> -> vector<8x128xf32>
    %c1_97 = arith.constant 1 : index
    %c0_98 = arith.constant 0 : index
    %c0_99 = arith.constant 0 : index
    %175 = vector.load %arg7[%c1_97, %c0_98, %c0_99] : memref<4x8x128xf32, #tpu.memory_space<vmem>>, vector<1x8x128xf32>
    %176 = vector.shape_cast %175 : vector<1x8x128xf32> to vector<8x128xf32>
    %177 = vector.shape_cast %174 : vector<8x128xf32> to vector<1x8x128xf32>
    tpu.vector_store %arg7[%c1_97, %c0_98, %c0_99], %177 {strides = array<i32>} : memref<4x8x128xf32, #tpu.memory_space<vmem>>, vector<1x8x128xf32>,
    %c2 = arith.constant 2 : index
    %178 = memref.load %arg0[%c2] : memref<4xi32, #tpu.memory_space<smem>>
    %c2_100 = arith.constant 2 : index
    %c0_101 = arith.constant 0 : index
    %c0_102 = arith.constant 0 : index
    %179 = vector.load %arg1[%c2_100, %c0_101, %c0_102] : memref<4x8x128xf32, #tpu.memory_space<vmem>>, vector<1x8x128xf32>
    %180 = vector.shape_cast %179 : vector<1x8x128xf32> to vector<8x128xf32>
    %181 = vector.broadcast %1 : vector<8x1xf32> to vector<8x128xf32>
    %182 = arith.subf %180, %181 : vector<8x128xf32>
    %c2_i32_103 = arith.constant 2 : i32
    %183 = arith.muli %178, %c2_i32_103 : i32
    %c0_i32_104 = arith.constant 0 : i32
    %184 = arith.addi %183, %c0_i32_104 : i32
    %185 = arith.index_cast %184 : i32 to index
    %c0_105 = arith.constant 0 : index
    %c0_106 = arith.constant 0 : index
    %186 = vector.load %arg3[%185, %c0_105, %c0_106] : memref<16x8x8xf32, #tpu.memory_space<vmem>>, vector<1x8x8xf32>
    %187 = vector.shape_cast %186 : vector<1x8x8xf32> to vector<8x8xf32>
    %cst_107 = arith.constant dense<0.000000e+00> : vector<8x128xf32>
    %188 = tpu.matmul %187, %182, %cst_107 {dimension_numbers = #tpu.dot_dimension_numbers<[1], [0], [0], [1], [0, 0, 1, 1], [], []>} : vector<8x8xf32>, vector<8x128xf32>, vector<8x128xf32> -> vector<8x128xf32>
    %c2_i32_108 = arith.constant 2 : i32
    %189 = arith.muli %178, %c2_i32_108 : i32
    %c0_i32_109 = arith.constant 0 : i32
    %190 = arith.addi %189, %c0_i32_109 : i32
    %191 = arith.index_cast %190 : i32 to index
    %c0_110 = arith.constant 0 : index
    %c0_111 = arith.constant 0 : index
    %192 = vector.load %arg5[%191, %c0_110, %c0_111] : memref<16x8x1xf32, #tpu.memory_space<vmem>>, vector<1x8x1xf32>
    %193 = vector.shape_cast %192 : vector<1x8x1xf32> to vector<8x1xf32>
    %194 = vector.broadcast %193 : vector<8x1xf32> to vector<8x128xf32>
    %195 = arith.addf %188, %194 : vector<8x128xf32>
    %196 = math.absf %195 : vector<8x128xf32>
    %cst_112 = arith.constant -2.000000e+00 : f32
    %197 = vector.broadcast %cst_112 : f32 to vector<8x128xf32>
    %198 = arith.mulf %197, %196 : vector<8x128xf32>
    %199 = math.exp %198 : vector<8x128xf32>
    %cst_113 = arith.constant 0.000000e+00 : f32
    %200 = vector.broadcast %cst_113 : f32 to vector<8x128xf32>
    %201 = arith.cmpf oge, %195, %200 : vector<8x128xf32>
    %cst_114 = arith.constant 1.000000e+00 : f32
    %cst_115 = arith.constant -1.000000e+00 : f32
    %202 = vector.broadcast %cst_114 : f32 to vector<8x128xf32>
    %203 = vector.broadcast %cst_115 : f32 to vector<8x128xf32>
    %204 = arith.select %201, %202, %203 : vector<8x128xi1>, vector<8x128xf32>
    %cst_116 = arith.constant 1.000000e+00 : f32
    %205 = vector.broadcast %cst_116 : f32 to vector<8x128xf32>
    %206 = arith.subf %205, %199 : vector<8x128xf32>
    %207 = arith.mulf %204, %206 : vector<8x128xf32>
    %cst_117 = arith.constant 1.000000e+00 : f32
    %208 = vector.broadcast %cst_117 : f32 to vector<8x128xf32>
    %209 = arith.addf %208, %199 : vector<8x128xf32>
    %210 = tpu.reciprocal %209 {approx = true} : vector<8x128xf32> -> vector<8x128xf32>
    %211 = arith.mulf %207, %210 : vector<8x128xf32>
    %cst_118 = arith.constant 1.000000e+00 : f32
    %212 = vector.broadcast %cst_118 : f32 to vector<8x128xf32>
    %213 = arith.addf %212, %199 : vector<8x128xf32>
    %214 = math.log %213 : vector<8x128xf32>
    %215 = arith.addf %196, %214 : vector<8x128xf32>
    %cst_119 = arith.constant 0.693147182 : f32
    %216 = vector.broadcast %cst_119 : f32 to vector<8x128xf32>
    %217 = arith.subf %215, %216 : vector<8x128xf32>
    %c2_i32_120 = arith.constant 2 : i32
    %218 = arith.muli %178, %c2_i32_120 : i32
    %c1_i32_121 = arith.constant 1 : i32
    %219 = arith.addi %218, %c1_i32_121 : i32
    %220 = arith.index_cast %219 : i32 to index
    %c0_122 = arith.constant 0 : index
    %c0_123 = arith.constant 0 : index
    %221 = vector.load %arg3[%220, %c0_122, %c0_123] : memref<16x8x8xf32, #tpu.memory_space<vmem>>, vector<1x8x8xf32>
    %222 = vector.shape_cast %221 : vector<1x8x8xf32> to vector<8x8xf32>
    %cst_124 = arith.constant dense<0.000000e+00> : vector<8x128xf32>
    %223 = tpu.matmul %222, %217, %cst_124 {dimension_numbers = #tpu.dot_dimension_numbers<[1], [0], [0], [1], [0, 0, 1, 1], [], []>} : vector<8x8xf32>, vector<8x128xf32>, vector<8x128xf32> -> vector<8x128xf32>
    %c2_i32_125 = arith.constant 2 : i32
    %224 = arith.muli %178, %c2_i32_125 : i32
    %c1_i32_126 = arith.constant 1 : i32
    %225 = arith.addi %224, %c1_i32_126 : i32
    %226 = arith.index_cast %225 : i32 to index
    %c0_127 = arith.constant 0 : index
    %c0_128 = arith.constant 0 : index
    %227 = vector.load %arg5[%226, %c0_127, %c0_128] : memref<16x8x1xf32, #tpu.memory_space<vmem>>, vector<1x8x1xf32>
    %228 = vector.shape_cast %227 : vector<1x8x1xf32> to vector<8x1xf32>
    %229 = vector.broadcast %228 : vector<8x1xf32> to vector<8x128xf32>
    %230 = arith.addf %223, %229 : vector<8x128xf32>
    %231 = math.absf %230 : vector<8x128xf32>
    %cst_129 = arith.constant -2.000000e+00 : f32
    %232 = vector.broadcast %cst_129 : f32 to vector<8x128xf32>
    %233 = arith.mulf %232, %231 : vector<8x128xf32>
    %234 = math.exp %233 : vector<8x128xf32>
    %cst_130 = arith.constant 0.000000e+00 : f32
    %235 = vector.broadcast %cst_130 : f32 to vector<8x128xf32>
    %236 = arith.cmpf oge, %230, %235 : vector<8x128xf32>
    %cst_131 = arith.constant 1.000000e+00 : f32
    %cst_132 = arith.constant -1.000000e+00 : f32
    %237 = vector.broadcast %cst_131 : f32 to vector<8x128xf32>
    %238 = vector.broadcast %cst_132 : f32 to vector<8x128xf32>
    %239 = arith.select %236, %237, %238 : vector<8x128xi1>, vector<8x128xf32>
    %cst_133 = arith.constant 1.000000e+00 : f32
    %240 = vector.broadcast %cst_133 : f32 to vector<8x128xf32>
    %241 = arith.subf %240, %234 : vector<8x128xf32>
    %242 = arith.mulf %239, %241 : vector<8x128xf32>
    %cst_134 = arith.constant 1.000000e+00 : f32
    %243 = vector.broadcast %cst_134 : f32 to vector<8x128xf32>
    %244 = arith.addf %243, %234 : vector<8x128xf32>
    %245 = tpu.reciprocal %244 {approx = true} : vector<8x128xf32> -> vector<8x128xf32>
    %246 = arith.mulf %242, %245 : vector<8x128xf32>
    %cst_135 = arith.constant 1.000000e+00 : f32
    %247 = vector.broadcast %cst_135 : f32 to vector<8x128xf32>
    %c2_i32_136 = arith.constant 2 : i32
    %248 = arith.muli %178, %c2_i32_136 : i32
    %c1_i32_137 = arith.constant 1 : i32
    %249 = arith.addi %248, %c1_i32_137 : i32
    %250 = arith.index_cast %249 : i32 to index
    %c0_138 = arith.constant 0 : index
    %c0_139 = arith.constant 0 : index
    %251 = vector.load %arg4[%250, %c0_138, %c0_139] : memref<16x8x8xf32, #tpu.memory_space<vmem>>, vector<1x8x8xf32>
    %252 = vector.shape_cast %251 : vector<1x8x8xf32> to vector<8x8xf32>
    %253 = arith.mulf %247, %246 : vector<8x128xf32>
    %cst_140 = arith.constant dense<0.000000e+00> : vector<8x128xf32>
    %254 = tpu.matmul %252, %253, %cst_140 {dimension_numbers = #tpu.dot_dimension_numbers<[1], [0], [0], [1], [0, 0, 1, 1], [], []>} : vector<8x8xf32>, vector<8x128xf32>, vector<8x128xf32> -> vector<8x128xf32>
    %c2_i32_141 = arith.constant 2 : i32
    %255 = arith.muli %178, %c2_i32_141 : i32
    %c0_i32_142 = arith.constant 0 : i32
    %256 = arith.addi %255, %c0_i32_142 : i32
    %257 = arith.index_cast %256 : i32 to index
    %c0_143 = arith.constant 0 : index
    %c0_144 = arith.constant 0 : index
    %258 = vector.load %arg4[%257, %c0_143, %c0_144] : memref<16x8x8xf32, #tpu.memory_space<vmem>>, vector<1x8x8xf32>
    %259 = vector.shape_cast %258 : vector<1x8x8xf32> to vector<8x8xf32>
    %260 = arith.mulf %254, %211 : vector<8x128xf32>
    %cst_145 = arith.constant dense<0.000000e+00> : vector<8x128xf32>
    %261 = tpu.matmul %259, %260, %cst_145 {dimension_numbers = #tpu.dot_dimension_numbers<[1], [0], [0], [1], [0, 0, 1, 1], [], []>} : vector<8x8xf32>, vector<8x128xf32>, vector<8x128xf32> -> vector<8x128xf32>
    %cst_146 = arith.constant dense<0.000000e+00> : vector<8x128xf32>
    %262 = tpu.matmul %0, %261, %cst_146 {dimension_numbers = #tpu.dot_dimension_numbers<[1], [0], [0], [1], [0, 0, 1, 1], [], []>} : vector<8x8xf32>, vector<8x128xf32>, vector<8x128xf32> -> vector<8x128xf32>
    %c2_147 = arith.constant 2 : index
    %c0_148 = arith.constant 0 : index
    %c0_149 = arith.constant 0 : index
    %263 = vector.load %arg7[%c2_147, %c0_148, %c0_149] : memref<4x8x128xf32, #tpu.memory_space<vmem>>, vector<1x8x128xf32>
    %264 = vector.shape_cast %263 : vector<1x8x128xf32> to vector<8x128xf32>
    %265 = vector.shape_cast %262 : vector<8x128xf32> to vector<1x8x128xf32>
    tpu.vector_store %arg7[%c2_147, %c0_148, %c0_149], %265 {strides = array<i32>} : memref<4x8x128xf32, #tpu.memory_space<vmem>>, vector<1x8x128xf32>,
    %c3 = arith.constant 3 : index
    %266 = memref.load %arg0[%c3] : memref<4xi32, #tpu.memory_space<smem>>
    %c3_150 = arith.constant 3 : index
    %c0_151 = arith.constant 0 : index
    %c0_152 = arith.constant 0 : index
    %267 = vector.load %arg1[%c3_150, %c0_151, %c0_152] : memref<4x8x128xf32, #tpu.memory_space<vmem>>, vector<1x8x128xf32>
    %268 = vector.shape_cast %267 : vector<1x8x128xf32> to vector<8x128xf32>
    %269 = vector.broadcast %1 : vector<8x1xf32> to vector<8x128xf32>
    %270 = arith.subf %268, %269 : vector<8x128xf32>
    %c2_i32_153 = arith.constant 2 : i32
    %271 = arith.muli %266, %c2_i32_153 : i32
    %c0_i32_154 = arith.constant 0 : i32
    %272 = arith.addi %271, %c0_i32_154 : i32
    %273 = arith.index_cast %272 : i32 to index
    %c0_155 = arith.constant 0 : index
    %c0_156 = arith.constant 0 : index
    %274 = vector.load %arg3[%273, %c0_155, %c0_156] : memref<16x8x8xf32, #tpu.memory_space<vmem>>, vector<1x8x8xf32>
    %275 = vector.shape_cast %274 : vector<1x8x8xf32> to vector<8x8xf32>
    %cst_157 = arith.constant dense<0.000000e+00> : vector<8x128xf32>
    %276 = tpu.matmul %275, %270, %cst_157 {dimension_numbers = #tpu.dot_dimension_numbers<[1], [0], [0], [1], [0, 0, 1, 1], [], []>} : vector<8x8xf32>, vector<8x128xf32>, vector<8x128xf32> -> vector<8x128xf32>
    %c2_i32_158 = arith.constant 2 : i32
    %277 = arith.muli %266, %c2_i32_158 : i32
    %c0_i32_159 = arith.constant 0 : i32
    %278 = arith.addi %277, %c0_i32_159 : i32
    %279 = arith.index_cast %278 : i32 to index
    %c0_160 = arith.constant 0 : index
    %c0_161 = arith.constant 0 : index
    %280 = vector.load %arg5[%279, %c0_160, %c0_161] : memref<16x8x1xf32, #tpu.memory_space<vmem>>, vector<1x8x1xf32>
    %281 = vector.shape_cast %280 : vector<1x8x1xf32> to vector<8x1xf32>
    %282 = vector.broadcast %281 : vector<8x1xf32> to vector<8x128xf32>
    %283 = arith.addf %276, %282 : vector<8x128xf32>
    %284 = math.absf %283 : vector<8x128xf32>
    %cst_162 = arith.constant -2.000000e+00 : f32
    %285 = vector.broadcast %cst_162 : f32 to vector<8x128xf32>
    %286 = arith.mulf %285, %284 : vector<8x128xf32>
    %287 = math.exp %286 : vector<8x128xf32>
    %cst_163 = arith.constant 0.000000e+00 : f32
    %288 = vector.broadcast %cst_163 : f32 to vector<8x128xf32>
    %289 = arith.cmpf oge, %283, %288 : vector<8x128xf32>
    %cst_164 = arith.constant 1.000000e+00 : f32
    %cst_165 = arith.constant -1.000000e+00 : f32
    %290 = vector.broadcast %cst_164 : f32 to vector<8x128xf32>
    %291 = vector.broadcast %cst_165 : f32 to vector<8x128xf32>
    %292 = arith.select %289, %290, %291 : vector<8x128xi1>, vector<8x128xf32>
    %cst_166 = arith.constant 1.000000e+00 : f32
    %293 = vector.broadcast %cst_166 : f32 to vector<8x128xf32>
    %294 = arith.subf %293, %287 : vector<8x128xf32>
    %295 = arith.mulf %292, %294 : vector<8x128xf32>
    %cst_167 = arith.constant 1.000000e+00 : f32
    %296 = vector.broadcast %cst_167 : f32 to vector<8x128xf32>
    %297 = arith.addf %296, %287 : vector<8x128xf32>
    %298 = tpu.reciprocal %297 {approx = true} : vector<8x128xf32> -> vector<8x128xf32>
    %299 = arith.mulf %295, %298 : vector<8x128xf32>
    %cst_168 = arith.constant 1.000000e+00 : f32
    %300 = vector.broadcast %cst_168 : f32 to vector<8x128xf32>
    %301 = arith.addf %300, %287 : vector<8x128xf32>
    %302 = math.log %301 : vector<8x128xf32>
    %303 = arith.addf %284, %302 : vector<8x128xf32>
    %cst_169 = arith.constant 0.693147182 : f32
    %304 = vector.broadcast %cst_169 : f32 to vector<8x128xf32>
    %305 = arith.subf %303, %304 : vector<8x128xf32>
    %c2_i32_170 = arith.constant 2 : i32
    %306 = arith.muli %266, %c2_i32_170 : i32
    %c1_i32_171 = arith.constant 1 : i32
    %307 = arith.addi %306, %c1_i32_171 : i32
    %308 = arith.index_cast %307 : i32 to index
    %c0_172 = arith.constant 0 : index
    %c0_173 = arith.constant 0 : index
    %309 = vector.load %arg3[%308, %c0_172, %c0_173] : memref<16x8x8xf32, #tpu.memory_space<vmem>>, vector<1x8x8xf32>
    %310 = vector.shape_cast %309 : vector<1x8x8xf32> to vector<8x8xf32>
    %cst_174 = arith.constant dense<0.000000e+00> : vector<8x128xf32>
    %311 = tpu.matmul %310, %305, %cst_174 {dimension_numbers = #tpu.dot_dimension_numbers<[1], [0], [0], [1], [0, 0, 1, 1], [], []>} : vector<8x8xf32>, vector<8x128xf32>, vector<8x128xf32> -> vector<8x128xf32>
    %c2_i32_175 = arith.constant 2 : i32
    %312 = arith.muli %266, %c2_i32_175 : i32
    %c1_i32_176 = arith.constant 1 : i32
    %313 = arith.addi %312, %c1_i32_176 : i32
    %314 = arith.index_cast %313 : i32 to index
    %c0_177 = arith.constant 0 : index
    %c0_178 = arith.constant 0 : index
    %315 = vector.load %arg5[%314, %c0_177, %c0_178] : memref<16x8x1xf32, #tpu.memory_space<vmem>>, vector<1x8x1xf32>
    %316 = vector.shape_cast %315 : vector<1x8x1xf32> to vector<8x1xf32>
    %317 = vector.broadcast %316 : vector<8x1xf32> to vector<8x128xf32>
    %318 = arith.addf %311, %317 : vector<8x128xf32>
    %319 = math.absf %318 : vector<8x128xf32>
    %cst_179 = arith.constant -2.000000e+00 : f32
    %320 = vector.broadcast %cst_179 : f32 to vector<8x128xf32>
    %321 = arith.mulf %320, %319 : vector<8x128xf32>
    %322 = math.exp %321 : vector<8x128xf32>
    %cst_180 = arith.constant 0.000000e+00 : f32
    %323 = vector.broadcast %cst_180 : f32 to vector<8x128xf32>
    %324 = arith.cmpf oge, %318, %323 : vector<8x128xf32>
    %cst_181 = arith.constant 1.000000e+00 : f32
    %cst_182 = arith.constant -1.000000e+00 : f32
    %325 = vector.broadcast %cst_181 : f32 to vector<8x128xf32>
    %326 = vector.broadcast %cst_182 : f32 to vector<8x128xf32>
    %327 = arith.select %324, %325, %326 : vector<8x128xi1>, vector<8x128xf32>
    %cst_183 = arith.constant 1.000000e+00 : f32
    %328 = vector.broadcast %cst_183 : f32 to vector<8x128xf32>
    %329 = arith.subf %328, %322 : vector<8x128xf32>
    %330 = arith.mulf %327, %329 : vector<8x128xf32>
    %cst_184 = arith.constant 1.000000e+00 : f32
    %331 = vector.broadcast %cst_184 : f32 to vector<8x128xf32>
    %332 = arith.addf %331, %322 : vector<8x128xf32>
    %333 = tpu.reciprocal %332 {approx = true} : vector<8x128xf32> -> vector<8x128xf32>
    %334 = arith.mulf %330, %333 : vector<8x128xf32>
    %cst_185 = arith.constant 1.000000e+00 : f32
    %335 = vector.broadcast %cst_185 : f32 to vector<8x128xf32>
    %c2_i32_186 = arith.constant 2 : i32
    %336 = arith.muli %266, %c2_i32_186 : i32
    %c1_i32_187 = arith.constant 1 : i32
    %337 = arith.addi %336, %c1_i32_187 : i32
    %338 = arith.index_cast %337 : i32 to index
    %c0_188 = arith.constant 0 : index
    %c0_189 = arith.constant 0 : index
    %339 = vector.load %arg4[%338, %c0_188, %c0_189] : memref<16x8x8xf32, #tpu.memory_space<vmem>>, vector<1x8x8xf32>
    %340 = vector.shape_cast %339 : vector<1x8x8xf32> to vector<8x8xf32>
    %341 = arith.mulf %335, %334 : vector<8x128xf32>
    %cst_190 = arith.constant dense<0.000000e+00> : vector<8x128xf32>
    %342 = tpu.matmul %340, %341, %cst_190 {dimension_numbers = #tpu.dot_dimension_numbers<[1], [0], [0], [1], [0, 0, 1, 1], [], []>} : vector<8x8xf32>, vector<8x128xf32>, vector<8x128xf32> -> vector<8x128xf32>
    %c2_i32_191 = arith.constant 2 : i32
    %343 = arith.muli %266, %c2_i32_191 : i32
    %c0_i32_192 = arith.constant 0 : i32
    %344 = arith.addi %343, %c0_i32_192 : i32
    %345 = arith.index_cast %344 : i32 to index
    %c0_193 = arith.constant 0 : index
    %c0_194 = arith.constant 0 : index
    %346 = vector.load %arg4[%345, %c0_193, %c0_194] : memref<16x8x8xf32, #tpu.memory_space<vmem>>, vector<1x8x8xf32>
    %347 = vector.shape_cast %346 : vector<1x8x8xf32> to vector<8x8xf32>
    %348 = arith.mulf %342, %299 : vector<8x128xf32>
    %cst_195 = arith.constant dense<0.000000e+00> : vector<8x128xf32>
    %349 = tpu.matmul %347, %348, %cst_195 {dimension_numbers = #tpu.dot_dimension_numbers<[1], [0], [0], [1], [0, 0, 1, 1], [], []>} : vector<8x8xf32>, vector<8x128xf32>, vector<8x128xf32> -> vector<8x128xf32>
    %cst_196 = arith.constant dense<0.000000e+00> : vector<8x128xf32>
    %350 = tpu.matmul %0, %349, %cst_196 {dimension_numbers = #tpu.dot_dimension_numbers<[1], [0], [0], [1], [0, 0, 1, 1], [], []>} : vector<8x8xf32>, vector<8x128xf32>, vector<8x128xf32> -> vector<8x128xf32>
    %c3_197 = arith.constant 3 : index
    %c0_198 = arith.constant 0 : index
    %c0_199 = arith.constant 0 : index
    %351 = vector.load %arg7[%c3_197, %c0_198, %c0_199] : memref<4x8x128xf32, #tpu.memory_space<vmem>>, vector<1x8x128xf32>
    %352 = vector.shape_cast %351 : vector<1x8x128xf32> to vector<8x128xf32>
    %353 = vector.shape_cast %350 : vector<8x128xf32> to vector<1x8x128xf32>
    tpu.vector_store %arg7[%c3_197, %c0_198, %c0_199], %353 {strides = array<i32>} : memref<4x8x128xf32, #tpu.memory_space<vmem>>, vector<1x8x128xf32>,
    return
  }
}

</mosaic_0001>

<bundles_post_ra>
// kernel: tpu_custom_call.1
= control target key start
LH: loop header
LB: loop body
LE: loop exit
PB: predicated region body
PF: predicated region fallthrough
CT: control target
= control target key end

     0   :  { %12 = vsyncpa [#allocation4], 0  ;;  %s2393_s0 = inlined_call_operand.vmem [shape: s32[4], index: 0, kind: input, shape index: {}]   ;;  %s2394_s1 = inlined_call_operand.vmem [shape: f32[4,8,128], index: 1, kind: input, shape index: {}]   ;;  %s2395_s2 = inlined_call_operand.vmem [shape: f32[8,1], index: 2, kind: input, shape index: {}]   ;;  %s2396_s3 = inlined_call_operand.vmem [shape: f32[16,8,8], index: 3, kind: input, shape index: {}]   ;;  %s2397_s4 = inlined_call_operand.vmem [shape: f32[16,8,8], index: 4, kind: input, shape index: {}]   ;;  %s2398_s5 = inlined_call_operand.vmem [shape: f32[16,8,1], index: 5, kind: input, shape index: {}]   ;;  %s2399_s6 = inlined_call_operand.vmem [shape: f32[8,8], index: 6, kind: input, shape index: {}]   ;;  %s2400_s7 = inlined_call_operand.hbm [shape: f32[4,8,128], index: 7, kind: output, shape index: {}]  }
   0x1   :  { %13 = vsyncpa [#allocation3], 0  ;;  %s20_s26 = sshll.u32 %s2393_s0, 4  ;;  %s21_s26 = int_to_ptr.vmem [resolvable:$true] %s20_s26 }
   0x2   :  { %s2102_s27 = scalar_lea.vmem %s21_s26, 16  ;;  %p2107_p1 = scmp.lt.s32.totalorder %s21_s26, %s21_s26 }
   0x3   :  { %p2103_p0 = scmp.ne.s32.totalorder %s21_s26, %s2102_s27  ;;  %p2108_p2 = scmp.lt.s32.totalorder %s2102_s27, %s2102_s27 }
   0x5   :  { %p2109_p3 = por %p2108_p2, %p2107_p1 }
   0x7   :  { %p2110_p4 = pnand %p2109_p3, %p2103_p0 }
   0x9   :  { %2113 = shalt.err (!%p2110_p4)
}
   0xa   :  { %s2140_s28 = smov [#allocation2]  }
   0xb   :  { %23 = dma.vmem_to_smem %s21_s26, 16, %s2140_s28, [#allocation4]  }
   0xc   :  { %2136 = dma.done.wait [#allocation4], 16  }
   0xd   :  { %2137 = vsyncadd [#allocation4], 4294967280 }
   0xe   :  { %39 = sfence }
   0xf   :  { %v41_v0 = vld [vmem:[%s2395_s2] sm:$0xff]  ;;  %s42_s8 = sld [smem:[#allocation2]]  ;;  %s1839_s9 = sld [smem:[#allocation2 + $0x1]]  ;;  %v2141_v1 = vmov 0   ;;  %v2142_v2 = vmov 0.0   ;;  %vm2143_vm0 = vmmov 0  }
  0x10   :  { %2060 = vset.pattern.permute.xlu0 %v2141_v1  ;;  %s1858_s0 = sld [smem:[#allocation2 + $0x2]]  ;;  %2061 = vset.pattern.permute.xlu1 %v2141_v1  ;;  %s1877_s10 = sld [smem:[#allocation2 + $0x3]]  ;;  %v43_v7 = vld [vmem:[%s2394_s1] sm:$0xff]  ;;  %vm61_vm1 = vcmask 64512   ;;  %v2144_v25 = vmov -1.0   ;;  %v1840_v50 = vld [vmem:[%s2394_s1 + $0x8] sm:$0xff] }
  0x11   :  { %46 = vperm.xlu0 %2060, %v41_v0   ;;  %1952 = vmatprep.subr.mxu0 %v2142_v2  ;;  %v2278_v57 = vld [vmem:[%s2399_s6] sm:$0xff] }
  0x12   :  { %1957 = vmatprep.subr.mxu1 %v2142_v2  ;;  %1954 = vmatprep.mubr.msk.f32.mxu0 %vm2143_vm0, %v2142_v2 }
  0x13   :  { %1959 = vmatprep.mubr.msk.f32.mxu1 %vm2143_vm0, %v2142_v2 }
  0x15   :  { %s2200_s2 = sshll.u32 %s42_s8, 4  ;;  %s2202_s11 = sshll.u32 %s1839_s9, 4 }
  0x16   :  { %s54_s14 = scalar_lea.vmem %s2398_s5, %s2200_s2  ;;  %s478_s17 = scalar_lea.vmem %s2398_s5, %s2202_s11 }
  0x17   :  { %v55_v3 = vld [vmem:[%s54_s14] sm:$0xff]  ;;  %s2212_s18 = sshll.u32 %s1858_s0, 4  ;;  %v1850_v4 = vld [vmem:[%s478_s17 + $0x8] sm:$0xff]  ;;  %s2218_s22 = sshll.u32 %s1877_s10, 4 }
  0x18   :  { %58 = vperm.xlu0 %2060, %v55_v3   ;;  %s899_s21 = scalar_lea.vmem %s2398_s5, %s2212_s18  ;;  %s1320_s25 = scalar_lea.vmem %s2398_s5, %s2218_s22  ;;  %v1831_v11 = vld [vmem:[%s54_s14 + $0x8] sm:$0xff]  ;;  %v479_v12 = vld [vmem:[%s478_s17] sm:$0xff] }
  0x19   :  { %v1869_v5 = vld [vmem:[%s899_s21 + $0x8] sm:$0xff]  ;;  %s2231_s30 = scalar_lea.vmem %s2396_s3, %s2200_s2  ;;  %158 = vperm.xlu1 %2061, %v1831_v11   ;;  %v900_v13 = vld [vmem:[%s899_s21] sm:$0xff]  ;;  %s1764_s9 = scalar_lea.vmem %s2397_s4, %s2200_s2 }
  0x1a   :  { %v1888_v6 = vld [vmem:[%s1320_s25 + $0x8] sm:$0xff]  ;;  %v53_v10 = vld [vmem:[%s2231_s30] sm:$0xff]  ;;  %s2263_s13 = scalar_lea.vmem %s2396_s3, %s2202_s11  ;;  %s1782_s17 = scalar_lea.vmem %s2397_s4, %s2202_s11 }
  0x1b   :  { %v1321_v14 = vld [vmem:[%s1320_s25] sm:$0xff]  ;;  %v1828_v34 = vld [vmem:[%s2231_s30 + $0x8] sm:$0xff]  ;;  %s2307_s23 = scalar_lea.vmem %s2396_s3, %s2212_s18  ;;  %s1800_s26 = scalar_lea.vmem %s2397_s4, %s2212_s18 }
  0x1c   :  { %581 = vperm.xlu0 %2060, %v1850_v4   ;;  %v1835_v49 = vld [vmem:[%s1764_s9 + $0x8] sm:$0xff]  ;;  %v321_v54 = vld [vmem:[%s1764_s9] sm:$0xff]  ;;  %s2346_s30 = scalar_lea.vmem %s2396_s3, %s2218_s22  ;;  %s1818_s5 = scalar_lea.vmem %s2397_s4, %s2218_s22 }
  0x1d   :  { %482 = vperm.xlu1 %2061, %v479_v12   ;;  %v477_v56 = vld [vmem:[%s2263_s13] sm:$0xff]  ;;  %s2145_s4 = smov [#allocation5]  }
  0x1e   :  { %s1738_s22 = sshll.u32 %s2145_s4, 4  ;;  %s1739_s22 = int_to_ptr.vmem [resolvable:$true] %s1738_s22 }
  0x1f   :  { %s2114_s8 = scalar_lea.vmem %s1739_s22, 512  ;;  %p2119_p6 = scmp.lt.s32.totalorder %s1739_s22, %s1739_s22 }
  0x20   :  { %1002 = vperm.xlu0 %2060, %v1869_v5   ;;  %p2115_p5 = scmp.ne.s32.totalorder %s1739_s22, %s2114_s8  ;;  %p2120_p7 = scmp.lt.s32.totalorder %s2114_s8, %s2114_s8 }
  0x21   :  { %903 = vperm.xlu1 %2061, %v900_v13  }
  0x22   :  { %p2121_p8 = por %p2120_p7, %p2119_p6 }
  0x24   :  { %1423 = vperm.xlu0 %2060, %v1888_v6   ;;  %p2122_p9 = pnand %p2121_p8, %p2115_p5 }
  0x25   :  { %1324 = vperm.xlu1 %2061, %v1321_v14  }
  0x90   :  { %v2233_v8 = vpop.permute.xlu0 %46 }
  0x91   :  { %v49_v9 = vsub.f32 %v43_v7, %v2233_v8  ;;  %v473_v55 = vsub.f32 %v1840_v50, %v2233_v8 }
  0x93   :  { %1953 = vmatpush3.msra.mxu0 %v49_v9 }
  0x94   :  { %1955 = vmatmul.mubr.msk.f32.vlgmr.msra.gmra.mrb[0].mxu0 %vm61_vm1, %v53_v10  ;;  %1962 = vmatprep.subr.mxu0 %v2142_v2 }
  0x95   :  { %1964 = vmatprep.mubr.msk.f32.mxu0 %vm2143_vm0, %v2142_v2 }
  0x97   :  { %v59_v15 = vpop.permute.xlu0 %58 }
  0x98   :  { %v159_v35 = vpop.permute.xlu1 %158 }
  0x9c   :  { %v483_v60 = vpop.permute.xlu1 %482 }
 0x167   :  { %v131_v16 = vpop.f32.mrb[0].mxu0 }
 0x168   :  { %v132_v17 = vadd.f32 %v131_v16, %v59_v15  ;;  %v1956_v18 = vpop.f32.mrb[1].mxu0  ;;  %v1847_v16 = vld [vmem:[%s2263_s13 + $0x8] sm:$0xff] }
 0x16a   :  { %v135_v19 = vand.u32 2147483647, %v132_v17  ;;  %vm139_vm2 = vcmp.ge.f32.partialorder %v132_v17, 0.0 }
 0x16b   :  { %v140_v26 = vsel %vm139_vm2, 1.0, %v2144_v25 }
 0x16c   :  { %v136_v20 = vmul.f32 -2.0, %v135_v19 }
 0x16e   :  { %v137_v21 = vmul.f32 1.442695, %v136_v20 }
 0x170   :  { %2062 = vpow2.f32 %v137_v21 }
 0x17a   :  { %v2063_v22 = vpop.eup %2062 }
 0x17b   :  { %v143_v23 = vadd.f32 1.0, %v2063_v22  ;;  %v141_v24 = vsub.f32 1.0, %v2063_v22 }
 0x17d   :  { %2064 = vrcp.f32 %v143_v23  ;;  %v142_v27 = vmul.f32 %v141_v24, %v140_v26 }
 0x17e   :  { %2066 = vlog2.f32 %v143_v23 }
 0x187   :  { %v2065_v28 = vpop.eup %2064 }
 0x188   :  { %v2067_v29 = vpop.eup %2066  ;;  %v145_v30 = vmul.f32 %v2065_v28, %v142_v27 }
 0x189   :  { %v147_v31 = vmul.f32 0.6931472, %v2067_v29 }
 0x18b   :  { %v148_v32 = vadd.f32 %v147_v31, %v135_v19  ;;  %v582_v19 = vpop.permute.xlu0 %581 }
 0x18d   :  { %v1825_v33 = vadd.f32 -0.6931472, %v148_v32 }
 0x18f   :  { %1958 = vmatpush3.msra.mxu1 %v1825_v33 }
 0x190   :  { %1960 = vmatmul.mubr.msk.f32.vlgmr.msra.gmra.mrb[0].mxu1 %vm61_vm1, %v1828_v34  ;;  %1967 = vmatprep.subr.mxu1 %v2142_v2  ;;  %v1854_v34 = vld [vmem:[%s1782_s17 + $0x8] sm:$0xff] }
 0x191   :  { %1969 = vmatprep.mubr.msk.f32.mxu1 %vm2143_vm0, %v2142_v2 }
 0x263   :  { %v230_v36 = vpop.f32.mrb[0].mxu1 }
 0x264   :  { %v231_v37 = vadd.f32 %v230_v36, %v159_v35  ;;  %v1961_v38 = vpop.f32.mrb[1].mxu1  ;;  %v1859_v35 = vld [vmem:[%s2394_s1 + $0x10] sm:$0xff] }
 0x266   :  { %v234_v39 = vand.u32 2147483647, %v231_v37  ;;  %vm238_vm3 = vcmp.ge.f32.partialorder %v231_v37, 0.0 }
 0x267   :  { %v239_v45 = vsel %vm238_vm3, 1.0, %v2144_v25 }
 0x268   :  { %v235_v40 = vmul.f32 -2.0, %v234_v39  ;;  %v744_v39 = vld [vmem:[%s1782_s17] sm:$0xff] }
 0x26a   :  { %v236_v41 = vmul.f32 1.442695, %v235_v40  ;;  %v894_v40 = vsub.f32 %v1859_v35, %v2233_v8 }
 0x26c   :  { %2068 = vpow2.f32 %v236_v41  ;;  %v898_v41 = vld [vmem:[%s2307_s23] sm:$0xff] }
 0x276   :  { %v2069_v42 = vpop.eup %2068 }
 0x277   :  { %v242_v43 = vadd.f32 1.0, %v2069_v42  ;;  %v240_v44 = vsub.f32 1.0, %v2069_v42 }
 0x279   :  { %2070 = vrcp.f32 %v242_v43  ;;  %v241_v46 = vmul.f32 %v240_v44, %v239_v45  ;;  %v904_v44 = vpop.permute.xlu1 %903 }
 0x283   :  { %v2071_v47 = vpop.eup %2070 }
 0x284   :  { %v244_v48 = vmul.f32 %v2071_v47, %v241_v46 }
 0x286   :  { %1963 = vmatpush3.msra.mxu0 %v244_v48 }
 0x287   :  { %1965 = vmatmul.mubr.msk.f32.vlgmr.msra.gmra.mrb[2].mxu0 %vm61_vm1, %v1835_v49  ;;  %1972 = vmatprep.subr.mxu0 %v2142_v2 }
 0x288   :  { %1974 = vmatprep.mubr.msk.f32.mxu0 %vm2143_vm0, %v2142_v2 }
 0x35a   :  { %v316_v51 = vpop.f32.mrb[2].mxu0 }
 0x35b   :  { %v322_v52 = vmul.f32 %v316_v51, %v145_v30  ;;  %v1966_v53 = vpop.f32.mrb[3].mxu0 }
 0x35d   :  { %1968 = vmatpush3.msra.mxu1 %v322_v52 }
 0x35e   :  { %1970 = vmatmul.mubr.msk.f32.vlgmr.msra.gmra.mrb[2].mxu1 %vm61_vm1, %v321_v54  ;;  %1977 = vmatprep.subr.mxu1 %v2142_v2 }
 0x35f   :  { %1978 = vmatpush3.msra.mxu1 %v473_v55  ;;  %1979 = vmatprep.mubr.msk.f32.mxu1 %vm2143_vm0, %v2142_v2 }
 0x360   :  { %1987 = vmatprep.subr.mxu1 %v2142_v2 }
 0x362   :  { %1980 = vmatmul.mubr.msk.f32.vlgmr.msra.gmra.mrb[4].mxu1 %vm61_vm1, %v477_v56 }
 0x363   :  { %1989 = vmatprep.mubr.msk.f32.mxu1 %vm2143_vm0, %v2142_v2 }
 0x431   :  { %v392_v58 = vpop.f32.mrb[2].mxu1 }
 0x432   :  { %v1971_v59 = vpop.f32.mrb[3].mxu1  ;;  %1973 = vmatpush3.msra.mxu0 %v392_v58 }
 0x433   :  { %1975 = vmatmul.mubr.msk.f32.vlgmr.msra.gmra.mrb[4].mxu0 %vm61_vm1, %v2278_v57  ;;  %1982 = vmatprep.subr.mxu0 %v2142_v2 }
 0x434   :  { %1984 = vmatprep.mubr.msk.f32.mxu0 %vm2143_vm0, %v2142_v2 }
 0x435   :  { %v554_v61 = vpop.f32.mrb[4].mxu1 }
 0x436   :  { %v555_v62 = vadd.f32 %v554_v61, %v483_v60  ;;  %v1981_v63 = vpop.f32.mrb[5].mxu1 }
 0x437   :  { %v1866_v63 = vld [vmem:[%s2307_s23 + $0x8] sm:$0xff] }
 0x438   :  { %v558_v0 = vand.u32 2147483647, %v555_v62  ;;  %vm562_vm4 = vcmp.ge.f32.partialorder %v555_v62, 0.0 }
 0x439   :  { %v563_v7 = vsel %vm562_vm4, 1.0, %v2144_v25 }
 0x43a   :  { %v559_v1 = vmul.f32 -2.0, %v558_v0 }
 0x43c   :  { %v560_v3 = vmul.f32 1.442695, %v559_v1 }
 0x43e   :  { %2072 = vpow2.f32 %v560_v3  ;;  %v1003_v3 = vpop.permute.xlu0 %1002 }
 0x448   :  { %v2073_v4 = vpop.eup %2072 }
 0x449   :  { %v566_v5 = vadd.f32 1.0, %v2073_v4  ;;  %v564_v6 = vsub.f32 1.0, %v2073_v4 }
 0x44b   :  { %2074 = vrcp.f32 %v566_v5  ;;  %v565_v9 = vmul.f32 %v564_v6, %v563_v7 }
 0x44c   :  { %2076 = vlog2.f32 %v566_v5 }
 0x455   :  { %v2075_v10 = vpop.eup %2074 }
 0x456   :  { %v2077_v11 = vpop.eup %2076  ;;  %v568_v12 = vmul.f32 %v2075_v10, %v565_v9 }
 0x457   :  { %v570_v13 = vmul.f32 0.6931472, %v2077_v11 }
 0x459   :  { %v571_v14 = vadd.f32 %v570_v13, %v558_v0 }
 0x45b   :  { %v1844_v15 = vadd.f32 -0.6931472, %v571_v14 }
 0x45d   :  { %1983 = vmatpush3.msra.mxu0 %v1844_v15 }
 0x45e   :  { %1985 = vmatmul.mubr.msk.f32.vlgmr.msra.gmra.mrb[6].mxu0 %vm61_vm1, %v1847_v16  ;;  %1992 = vmatprep.subr.mxu0 %v2142_v2 }
 0x45f   :  { %1994 = vmatprep.mubr.msk.f32.mxu0 %vm2143_vm0, %v2142_v2 }
 0x506   :  { %v465_v17 = vpop.f32.mrb[4].mxu0 }
 0x507   :  { %469 = vst [vmem:[#allocation5] sm:$0xff] %v465_v17  ;;  %v1976_v18 = vpop.f32.mrb[5].mxu0 }
 0x508   :  { %v1873_v18 = vld [vmem:[%s1800_s26 + $0x8] sm:$0xff] }
 0x531   :  { %v653_v20 = vpop.f32.mrb[6].mxu0 }
 0x532   :  { %v654_v21 = vadd.f32 %v653_v20, %v582_v19  ;;  %v1986_v22 = vpop.f32.mrb[7].mxu0  ;;  %v1878_v19 = vld [vmem:[%s2394_s1 + $0x18] sm:$0xff] }
 0x534   :  { %v657_v23 = vand.u32 2147483647, %v654_v21  ;;  %vm661_vm5 = vcmp.ge.f32.partialorder %v654_v21, 0.0 }
 0x535   :  { %v662_v30 = vsel %vm661_vm5, 1.0, %v2144_v25 }
 0x536   :  { %v658_v24 = vmul.f32 -2.0, %v657_v23  ;;  %v1165_v23 = vld [vmem:[%s1800_s26] sm:$0xff] }
 0x538   :  { %v659_v26 = vmul.f32 1.442695, %v658_v24  ;;  %v1315_v24 = vsub.f32 %v1878_v19, %v2233_v8  ;;  %v1325_v8 = vpop.permute.xlu1 %1324 }
 0x53a   :  { %2078 = vpow2.f32 %v659_v26  ;;  %v1319_v26 = vld [vmem:[%s2346_s30] sm:$0xff] }
 0x544   :  { %v2079_v27 = vpop.eup %2078 }
 0x545   :  { %v665_v28 = vadd.f32 1.0, %v2079_v27  ;;  %v663_v29 = vsub.f32 1.0, %v2079_v27 }
 0x547   :  { %2080 = vrcp.f32 %v665_v28  ;;  %v664_v31 = vmul.f32 %v663_v29, %v662_v30 }
 0x551   :  { %v2081_v32 = vpop.eup %2080 }
 0x552   :  { %v667_v33 = vmul.f32 %v2081_v32, %v664_v31 }
 0x554   :  { %1988 = vmatpush3.msra.mxu1 %v667_v33 }
 0x555   :  { %1990 = vmatmul.mubr.msk.f32.vlgmr.msra.gmra.mrb[6].mxu1 %vm61_vm1, %v1854_v34  ;;  %1997 = vmatprep.subr.mxu1 %v2142_v2 }
 0x556   :  { %1999 = vmatprep.mubr.msk.f32.mxu1 %vm2143_vm0, %v2142_v2 }
 0x628   :  { %v739_v36 = vpop.f32.mrb[6].mxu1 }
 0x629   :  { %v745_v37 = vmul.f32 %v739_v36, %v568_v12  ;;  %v1991_v38 = vpop.f32.mrb[7].mxu1 }
 0x62b   :  { %1993 = vmatpush3.msra.mxu0 %v745_v37 }
 0x62c   :  { %1995 = vmatmul.mubr.msk.f32.vlgmr.msra.gmra.mrb[8].mxu0 %vm61_vm1, %v744_v39  ;;  %2002 = vmatprep.subr.mxu0 %v2142_v2 }
 0x62d   :  { %2003 = vmatpush3.msra.mxu0 %v894_v40  ;;  %2004 = vmatprep.mubr.msk.f32.mxu0 %vm2143_vm0, %v2142_v2 }
 0x62e   :  { %2012 = vmatprep.subr.mxu0 %v2142_v2 }
 0x630   :  { %2005 = vmatmul.mubr.msk.f32.vlgmr.msra.gmra.mrb[10].mxu0 %vm61_vm1, %v898_v41 }
 0x631   :  { %2014 = vmatprep.mubr.msk.f32.mxu0 %vm2143_vm0, %v2142_v2 }
 0x6ff   :  { %v815_v42 = vpop.f32.mrb[8].mxu0 }
 0x700   :  { %v1996_v43 = vpop.f32.mrb[9].mxu0  ;;  %1998 = vmatpush3.msra.mxu1 %v815_v42 }
 0x701   :  { %2000 = vmatmul.mubr.msk.f32.vlgmr.msra.gmra.mrb[8].mxu1 %vm61_vm1, %v2278_v57  ;;  %2007 = vmatprep.subr.mxu1 %v2142_v2 }
 0x702   :  { %2009 = vmatprep.mubr.msk.f32.mxu1 %vm2143_vm0, %v2142_v2 }
 0x703   :  { %v975_v45 = vpop.f32.mrb[10].mxu0 }
 0x704   :  { %v976_v46 = vadd.f32 %v975_v45, %v904_v44  ;;  %v2006_v47 = vpop.f32.mrb[11].mxu0 }
 0x706   :  { %v979_v48 = vand.u32 2147483647, %v976_v46  ;;  %vm983_vm6 = vcmp.ge.f32.partialorder %v976_v46, 0.0  ;;  %v1885_v46 = vld [vmem:[%s2346_s30 + $0x8] sm:$0xff] }
 0x707   :  { %v984_v54 = vsel %vm983_vm6, 1.0, %v2144_v25 }
 0x708   :  { %v980_v49 = vmul.f32 -2.0, %v979_v48 }
 0x70a   :  { %v981_v50 = vmul.f32 1.442695, %v980_v49  ;;  %v1424_v49 = vpop.permute.xlu0 %1423 }
 0x70c   :  { %2082 = vpow2.f32 %v981_v50 }
 0x716   :  { %v2083_v51 = vpop.eup %2082 }
 0x717   :  { %v987_v52 = vadd.f32 1.0, %v2083_v51  ;;  %v985_v53 = vsub.f32 1.0, %v2083_v51 }
 0x719   :  { %2084 = vrcp.f32 %v987_v52  ;;  %v986_v55 = vmul.f32 %v985_v53, %v984_v54 }
 0x71a   :  { %2086 = vlog2.f32 %v987_v52 }
 0x723   :  { %v2085_v56 = vpop.eup %2084 }
 0x724   :  { %v2087_v58 = vpop.eup %2086  ;;  %v989_v59 = vmul.f32 %v2085_v56, %v986_v55 }
 0x725   :  { %v991_v60 = vmul.f32 0.6931472, %v2087_v58 }
 0x727   :  { %v992_v61 = vadd.f32 %v991_v60, %v979_v48 }
 0x729   :  { %v1863_v62 = vadd.f32 -0.6931472, %v992_v61 }
 0x72b   :  { %2008 = vmatpush3.msra.mxu1 %v1863_v62 }
 0x72c   :  { %2010 = vmatmul.mubr.msk.f32.vlgmr.msra.gmra.mrb[10].mxu1 %vm61_vm1, %v1866_v63  ;;  %2017 = vmatprep.subr.mxu1 %v2142_v2 }
 0x72d   :  { %2019 = vmatprep.mubr.msk.f32.mxu1 %vm2143_vm0, %v2142_v2 }
 0x7d4   :  { %v885_v0 = vpop.f32.mrb[8].mxu1 }
 0x7d5   :  { %890 = vst [vmem:[#allocation5 + $0x8] sm:$0xff] %v885_v0  ;;  %v2001_v1 = vpop.f32.mrb[9].mxu1  ;;  %v1892_v0 = vld [vmem:[%s1818_s5 + $0x8] sm:$0xff] }
 0x7ff   :  { %v1074_v4 = vpop.f32.mrb[10].mxu1 }
 0x800   :  { %v1075_v5 = vadd.f32 %v1074_v4, %v1003_v3  ;;  %v2011_v6 = vpop.f32.mrb[11].mxu1 }
 0x802   :  { %v1078_v7 = vand.u32 2147483647, %v1075_v5  ;;  %vm1082_vm7 = vcmp.ge.f32.partialorder %v1075_v5, 0.0 }
 0x803   :  { %v1083_v14 = vsel %vm1082_vm7, 1.0, %v2144_v25 }
 0x804   :  { %v1079_v9 = vmul.f32 -2.0, %v1078_v7 }
 0x806   :  { %v1080_v10 = vmul.f32 1.442695, %v1079_v9 }
 0x808   :  { %2088 = vpow2.f32 %v1080_v10 }
 0x812   :  { %v2089_v11 = vpop.eup %2088 }
 0x813   :  { %v1086_v12 = vadd.f32 1.0, %v2089_v11  ;;  %v1084_v13 = vsub.f32 1.0, %v2089_v11 }
 0x815   :  { %2090 = vrcp.f32 %v1086_v12  ;;  %v1085_v15 = vmul.f32 %v1084_v13, %v1083_v14 }
 0x81f   :  { %v2091_v16 = vpop.eup %2090 }
 0x820   :  { %v1088_v17 = vmul.f32 %v2091_v16, %v1085_v15 }
 0x822   :  { %2013 = vmatpush3.msra.mxu0 %v1088_v17 }
 0x823   :  { %2015 = vmatmul.mubr.msk.f32.vlgmr.msra.gmra.mrb[12].mxu0 %vm61_vm1, %v1873_v18  ;;  %2022 = vmatprep.subr.mxu0 %v2142_v2 }
 0x824   :  { %2024 = vmatprep.mubr.msk.f32.mxu0 %vm2143_vm0, %v2142_v2 }
 0x8f6   :  { %v1160_v20 = vpop.f32.mrb[12].mxu0 }
 0x8f7   :  { %v1166_v21 = vmul.f32 %v1160_v20, %v989_v59  ;;  %v2016_v22 = vpop.f32.mrb[13].mxu0 }
 0x8f9   :  { %2018 = vmatpush3.msra.mxu1 %v1166_v21 }
 0x8fa   :  { %2020 = vmatmul.mubr.msk.f32.vlgmr.msra.gmra.mrb[12].mxu1 %vm61_vm1, %v1165_v23  ;;  %2027 = vmatprep.subr.mxu1 %v2142_v2 }
 0x8fb   :  { %2028 = vmatpush3.msra.mxu1 %v1315_v24  ;;  %2029 = vmatprep.mubr.msk.f32.mxu1 %vm2143_vm0, %v2142_v2 }
 0x8fc   :  { %2037 = vmatprep.subr.mxu1 %v2142_v2 }
 0x8fe   :  { %2030 = vmatmul.mubr.msk.f32.vlgmr.msra.gmra.mrb[14].mxu1 %vm61_vm1, %v1319_v26 }
 0x8ff   :  { %2039 = vmatprep.mubr.msk.f32.mxu1 %vm2143_vm0, %v2142_v2 }
 0x9cd   :  { %v1236_v27 = vpop.f32.mrb[12].mxu1 }
 0x9ce   :  { %v2021_v28 = vpop.f32.mrb[13].mxu1  ;;  %2023 = vmatpush3.msra.mxu0 %v1236_v27 }
 0x9cf   :  { %2025 = vmatmul.mubr.msk.f32.vlgmr.msra.gmra.mrb[14].mxu0 %vm61_vm1, %v2278_v57  ;;  %2032 = vmatprep.subr.mxu0 %v2142_v2 }
 0x9d0   :  { %2034 = vmatprep.mubr.msk.f32.mxu0 %vm2143_vm0, %v2142_v2 }
 0x9d1   :  { %v1396_v29 = vpop.f32.mrb[14].mxu1 }
 0x9d2   :  { %v1397_v30 = vadd.f32 %v1396_v29, %v1325_v8  ;;  %v2031_v31 = vpop.f32.mrb[15].mxu1 }
 0x9d4   :  { %v1400_v32 = vand.u32 2147483647, %v1397_v30  ;;  %vm1404_vm8 = vcmp.ge.f32.partialorder %v1397_v30, 0.0 }
 0x9d5   :  { %v1405_v38 = vsel %vm1404_vm8, 1.0, %v2144_v25 }
 0x9d6   :  { %v1401_v33 = vmul.f32 -2.0, %v1400_v32 }
 0x9d8   :  { %v1402_v34 = vmul.f32 1.442695, %v1401_v33 }
 0x9da   :  { %2092 = vpow2.f32 %v1402_v34 }
 0x9e4   :  { %v2093_v35 = vpop.eup %2092 }
 0x9e5   :  { %v1408_v36 = vadd.f32 1.0, %v2093_v35  ;;  %v1406_v37 = vsub.f32 1.0, %v2093_v35 }
 0x9e7   :  { %2094 = vrcp.f32 %v1408_v36  ;;  %v1407_v39 = vmul.f32 %v1406_v37, %v1405_v38 }
 0x9e8   :  { %2096 = vlog2.f32 %v1408_v36 }
 0x9f1   :  { %v2095_v40 = vpop.eup %2094 }
 0x9f2   :  { %v2097_v41 = vpop.eup %2096  ;;  %v1410_v42 = vmul.f32 %v2095_v40, %v1407_v39 }
 0x9f3   :  { %v1412_v43 = vmul.f32 0.6931472, %v2097_v41 }
 0x9f5   :  { %v1413_v44 = vadd.f32 %v1412_v43, %v1400_v32 }
 0x9f7   :  { %v1882_v45 = vadd.f32 -0.6931472, %v1413_v44 }
 0x9f9   :  { %2033 = vmatpush3.msra.mxu0 %v1882_v45 }
 0x9fa   :  { %2035 = vmatmul.mubr.msk.f32.vlgmr.msra.gmra.mrb[16].mxu0 %vm61_vm1, %v1885_v46  ;;  %2042 = vmatprep.subr.mxu0 %v2142_v2 }
 0x9fb   :  { %2044 = vmatprep.mubr.msk.f32.mxu0 %vm2143_vm0, %v2142_v2 }
 0xaa2   :  { %v1306_v47 = vpop.f32.mrb[14].mxu0 }
 0xaa3   :  { %1311 = vst [vmem:[#allocation5 + $0x10] sm:$0xff] %v1306_v47  ;;  %v2026_v48 = vpop.f32.mrb[15].mxu0 }
 0xacd   :  { %v1495_v50 = vpop.f32.mrb[16].mxu0 }
 0xace   :  { %v1496_v51 = vadd.f32 %v1495_v50, %v1424_v49  ;;  %v2036_v52 = vpop.f32.mrb[17].mxu0 }
 0xad0   :  { %v1499_v53 = vand.u32 2147483647, %v1496_v51  ;;  %vm1503_vm9 = vcmp.ge.f32.partialorder %v1496_v51, 0.0 }
 0xad1   :  { %v1504_v60 = vsel %vm1503_vm9, 1.0, %v2144_v25  ;;  %v1586_v25 = vld [vmem:[%s1818_s5] sm:$0xff] }
 0xad2   :  { %v1500_v54 = vmul.f32 -2.0, %v1499_v53 }
 0xad4   :  { %v1501_v55 = vmul.f32 1.442695, %v1500_v54 }
 0xad6   :  { %2098 = vpow2.f32 %v1501_v55 }
 0xae0   :  { %v2099_v56 = vpop.eup %2098 }
 0xae1   :  { %v1507_v58 = vadd.f32 1.0, %v2099_v56  ;;  %v1505_v59 = vsub.f32 1.0, %v2099_v56 }
 0xae3   :  { %2100 = vrcp.f32 %v1507_v58  ;;  %v1506_v61 = vmul.f32 %v1505_v59, %v1504_v60 }
 0xaed   :  { %v2101_v62 = vpop.eup %2100 }
 0xaee   :  { %v1509_v63 = vmul.f32 %v2101_v62, %v1506_v61 }
 0xaf0   :  { %2038 = vmatpush3.msra.mxu1 %v1509_v63 }
 0xaf1   :  { %2040 = vmatmul.mubr.msk.f32.vlgmr.msra.gmra.mrb[16].mxu1 %vm61_vm1, %v1892_v0  ;;  %2047 = vmatprep.subr.mxu1 %v2142_v2 }
 0xaf2   :  { %2049 = vmatprep.mubr.msk.f32.mxu1 %vm2143_vm0, %v2142_v2 }
 0xbc4   :  { %v1581_v1 = vpop.f32.mrb[16].mxu1 }
 0xbc5   :  { %v1587_v3 = vmul.f32 %v1581_v1, %v1410_v42  ;;  %v2041_v4 = vpop.f32.mrb[17].mxu1 }
 0xbc7   :  { %2043 = vmatpush3.msra.mxu0 %v1587_v3 }
 0xbc8   :  { %2045 = vmatmul.mubr.msk.f32.vlgmr.msra.gmra.mrb[18].mxu0 %vm61_vm1, %v1586_v25 }
 0xc9b   :  { %v1657_v5 = vpop.f32.mrb[18].mxu0 }
 0xc9c   :  { %v2046_v6 = vpop.f32.mrb[19].mxu0  ;;  %2048 = vmatpush3.msra.mxu1 %v1657_v5 }
 0xc9d   :  { %2050 = vmatmul.mubr.msk.f32.vlgmr.msra.gmra.mrb[18].mxu1 %vm61_vm1, %v2278_v57 }
 0xd70   :  { %v1727_v7 = vpop.f32.mrb[18].mxu1 }
 0xd71   :  { %1732 = vst [vmem:[#allocation5 + $0x18] sm:$0xff] %v1727_v7  ;;  %v2051_v9 = vpop.f32.mrb[19].mxu1 }
 0xd72   :  { %2125 = shalt.err (!%p2122_p9)
}
 0xd73   :  { %s2126_s10 = scalar_lea.hbm %s2400_s7, 512 }
 0xd74   :  { %p2127_p10 = scmp.ne.s32.totalorder %s2400_s7, %s2126_s10  ;;  %p2130_p11 = scmp.lt.u32.totalorder %s2126_s10, %s2400_s7 }
 0xd76   :  { %p2132_p12 = pnand %p2130_p11, %p2127_p10 }
 0xd78   :  { %2135 = shalt.err (!%p2132_p12)
}
 0xd79   :  { %s2146_s15 = smov 128   ;;  %s2147_s6 = smov 8  }
 0xd7a   :  { %1744 = dma.vmem_to_hbm [thread:$0]  %s1739_s22, 512, %s2400_s7, [#allocation3], %s2146_s15, %s2146_s15, %s2147_s6  }
 0xd7b   :  { %2138 = dma.done.wait [#allocation3], 512  }
 0xd7c   :  { %2139 = vsyncadd [#allocation3], 4294966784 }
 0xd7d   :  { %1748 = vsyncpa [#allocation3], 1 }
 0xd7e   :  { %1749 = vsyncpa [#allocation4], 1 }

</bundles_post_ra>
